<compile_context>
chip_gen: v7x
topology: tpu7x:2x2x1
jax: 0.10.0
libtpu: 0.0.40
codegen_flags: <defaults>
</compile_context>

<pallas_src>
import functools

import jax
import jax.numpy as jnp
from jax.experimental import pallas as pl
from jax.experimental.pallas import tpu as pltpu


# ---------------------------------------------------------------------------
# Kernel 1: per-row (n,c) sum / sum-of-squares / min / max over the HW axis.
# Outputs are lane-wide (num_chunks, NC, 128) partial accumulators; the tiny
# final cross-lane / cross-chunk reduction happens in the wrapper.
# ---------------------------------------------------------------------------
def _stats_kernel(x_ref, sum_ref, sq_ref, min_ref, max_ref, *,
                  hw, tile_hw, num_hw_tiles, tiles_per_chunk, grid_padded):
    t = pl.program_id(2)                          # tile index within chunk
    gt = pl.program_id(1) * tiles_per_chunk + t   # global HW-tile index

    @pl.when(t == 0)
    def _():
        sum_ref[...] = jnp.zeros_like(sum_ref)
        sq_ref[...] = jnp.zeros_like(sq_ref)
        min_ref[...] = jnp.full(min_ref.shape, jnp.inf, jnp.float32)
        max_ref[...] = jnp.full(max_ref.shape, -jnp.inf, jnp.float32)

    rows = x_ref.shape[0]
    cols = tile_hw // 128
    has_tail = (hw % tile_hw) != 0                # static

    def accumulate(masked):
        base = gt * tile_hw
        if masked:
            lane = jax.lax.broadcasted_iota(jnp.int32, (rows, 128), 1)

        def body(j, carry):
            s, q, mn, mx = carry
            off = j * 128
            if not isinstance(j, int):
                off = pl.multiple_of(off, 128)
            xc = x_ref[:, pl.ds(off, 128)].astype(jnp.float32)
            if masked:
                valid = (base + off + lane) < hw
                xs = jnp.where(valid, xc, 0.0)
                xmn = jnp.where(valid, xc, jnp.inf)
                xmx = jnp.where(valid, xc, -jnp.inf)
            else:
                xs = xmn = xmx = xc
            return (s + xs, q + xs * xs,
                    jnp.minimum(mn, xmn), jnp.maximum(mx, xmx))

        carry = (sum_ref[...], sq_ref[...], min_ref[...], max_ref[...])
        if cols <= 8:
            # Short fixed trip-count: static unroll is fine.
            for j in range(cols):
                carry = body(j, carry)
        else:
            # Bound live ranges of the per-chunk loads with a real loop.
            carry = jax.lax.fori_loop(0, cols, body, carry, unroll=2)
        s, q, mn, mx = carry
        sum_ref[...] = s
        sq_ref[...] = q
        min_ref[...] = mn
        max_ref[...] = mx

    last = num_hw_tiles - 1
    if has_tail:
        # Unmasked fast path for all interior tiles; mask only the last one.
        @pl.when(gt < last)
        def _():
            accumulate(False)

        @pl.when(gt == last)
        def _():
            accumulate(True)
    elif grid_padded:
        # Chunk padding only: skip the (clamped, duplicated) padded tile.
        @pl.when(gt < num_hw_tiles)
        def _():
            accumulate(False)
    else:
        accumulate(False)


# ---------------------------------------------------------------------------
# Kernel 2 (fused): y = x*scale + shift ; hardtanh clamp ; round(y/delta)*delta.
# Scalars (delta, 1/delta, bound) come in through SMEM; the divide is replaced
# by a multiply with the precomputed reciprocal.  OOB lanes of the last tile
# compute garbage but their writes are dropped by Pallas (do not reuse them).
# ---------------------------------------------------------------------------
def _bn_quant_kernel(qp_ref, scale_ref, shift_ref, x_ref, o_ref):
    delta = qp_ref[0]
    inv_delta = qp_ref[1]
    bound = qp_ref[2]
    x = x_ref[...].astype(jnp.float32)
    y = x * scale_ref[...] + shift_ref[...]
    y = jnp.clip(y, -bound, bound)
    o_ref[...] = (jnp.round(y * inv_delta) * delta).astype(o_ref.dtype)


def qbn2d_forward(x_nchw, gamma, beta, *, qbit=4, eps=1e-5):
    """Training-mode QBN2d forward. x_nchw: (N, C, H, W)."""
    N, C, H, W = x_nchw.shape
    HW = H * W
    NC = N * C
    h_lvl = float(2 ** (qbit - 1) - 1)
    x_dtype = x_nchw.dtype
    itemsize = jnp.dtype(x_dtype).itemsize

    # NCHW-native layout: (N*C, H*W) is a free contiguous reshape; keep the
    # input dtype (no extra HBM copy), kernels upcast in-register.
    x2 = x_nchw.reshape(NC, HW)

    # ---- generation-aware VMEM policy --------------------------------------
    vmem_cap = 64 << 20                       # conservative default (v7x per-TC)
    try:
        vmem_cap = int(pltpu.get_tpu_info().vmem_capacity_bytes)
    except Exception:
        pass
    vmem_limit = int(min(48 << 20, max(16 << 20, vmem_cap // 2)))

    # ---- tiling -------------------------------------------------------------
    # Row blocking bounds VMEM/vreg pressure independently of NC (4 lane-wide
    # accumulators -> at most 4*8 = 32 vregs at 64 rows) and gives a parallel
    # grid axis.
    rows_blk = NC if NC <= 64 else 64
    num_row_blocks = pl.cdiv(NC, rows_blk)

    # Target ~1-2 MiB per x block (both passes are HBM-bound; this amortizes
    # the ~0.35us/step grid overhead) while keeping pass 2's double-buffered
    # in+out footprint comfortably under the scoped VMEM limit.
    target_block_bytes = min(2 << 20, vmem_limit // 12)
    lane_cols = pl.cdiv(HW, 128)
    cols_per_tile = max(1, min(lane_cols,
                               target_block_bytes // (rows_blk * 128 * itemsize)))
    tile_hw = cols_per_tile * 128
    num_hw_tiles = pl.cdiv(HW, tile_hw)

    # Unconditional 2-way split of the reduction axis so both v7x TensorCores
    # stay busy even for odd tile counts (neutral on single-TC v5e/v6e).
    num_chunks = 2 if num_hw_tiles >= 2 else 1
    tiles_per_chunk = pl.cdiv(num_hw_tiles, num_chunks)
    grid_padded = (num_chunks * tiles_per_chunk) != num_hw_tiles

    # ---- pass 1: per-row statistics -----------------------------------------
    stats_shape = jax.ShapeDtypeStruct((num_chunks, NC, 128), jnp.float32)
    stats_spec = pl.BlockSpec((None, rows_blk, 128), lambda r, c, t: (c, r, 0))

    def x_stats_index(r, c, t):
        gt = c * tiles_per_chunk + t
        if grid_padded:
            gt = jnp.minimum(gt, num_hw_tiles - 1)   # padded tile: clamp (skipped)
        return (r, gt)

    x_stats_spec = pl.BlockSpec((rows_blk, tile_hw), x_stats_index)

    sums, sqs, mins, maxs = pl.pallas_call(
        functools.partial(_stats_kernel, hw=HW, tile_hw=tile_hw,
                          num_hw_tiles=num_hw_tiles,
                          tiles_per_chunk=tiles_per_chunk,
                          grid_padded=grid_padded),
        out_shape=(stats_shape,) * 4,
        grid=(num_row_blocks, num_chunks, tiles_per_chunk),
        in_specs=[x_stats_spec],
        out_specs=(stats_spec,) * 4,
        compiler_params=pltpu.CompilerParams(
            dimension_semantics=("parallel", "parallel", "arbitrary"),
            vmem_limit_bytes=vmem_limit),
        cost_estimate=pl.CostEstimate(
            flops=6 * NC * HW, transcendentals=0,
            bytes_accessed=NC * HW * itemsize + 4 * num_chunks * NC * 128 * 4),
    )(x2)

    # Tiny final reductions (lanes + chunks + batch) in plain JAX.
    row_sum = sums.sum(axis=(0, 2))                  # (NC,)
    row_sq = sqs.sum(axis=(0, 2))
    row_min = mins.min(axis=(0, 2))
    row_max = maxs.max(axis=(0, 2))

    ch_sum = row_sum.reshape(N, C).sum(axis=0)       # (C,)
    ch_sq = row_sq.reshape(N, C).sum(axis=0)
    ch_min = row_min.reshape(N, C).min(axis=0)
    ch_max = row_max.reshape(N, C).max(axis=0)

    L = float(N * HW)
    mean = ch_sum / L
    # Biased variance (BN train); clamp to >=0 to guard against the E[x^2]-E[x]^2
    # cancellation pushing it slightly negative for large-mean inputs.
    var = jnp.maximum(ch_sq / L - mean * mean, 0.0)
    inv_std = jax.lax.rsqrt(var + eps)
    scale_c = gamma.astype(jnp.float32) * inv_std
    shift_c = beta.astype(jnp.float32) - mean * scale_c

    # Exact global abs-max of y = scale*x + shift without a second data pass:
    # an affine function of x attains its |max| at a per-channel endpoint of x.
    gmax = jnp.max(jnp.maximum(jnp.abs(scale_c * ch_max + shift_c),
                               jnp.abs(scale_c * ch_min + shift_c)))
    delta = gmax / h_lvl
    # Guard against an all-zero activation (reference would produce NaN); for
    # any nonzero input this is a no-op.
    delta = jnp.maximum(delta, jnp.float32(1e-30))
    inv_delta = 1.0 / delta
    bound = h_lvl * delta
    qparams = jnp.stack([delta, inv_delta, bound]).astype(jnp.float32)  # (3,)

    # Per-row (n,c) affine parameters for the fused pass.
    scale_rows = jnp.broadcast_to(scale_c[None, :], (N, C)).reshape(NC, 1)
    shift_rows = jnp.broadcast_to(shift_c[None, :], (N, C)).reshape(NC, 1)

    # ---- pass 2 (fused): BN affine + hardtanh + quantize --------------------
    # TODO(synk): if the caller can donate x, alias the output onto x2 via
    #             input_output_aliases to drop a full-size HBM allocation.
    out = pl.pallas_call(
        _bn_quant_kernel,
        out_shape=jax.ShapeDtypeStruct((NC, HW), x_dtype),
        grid=(num_row_blocks, num_hw_tiles),
        in_specs=[pl.BlockSpec(memory_space=pltpu.MemorySpace.SMEM),
                  pl.BlockSpec((rows_blk, 1), lambda r, t: (r, 0)),
                  pl.BlockSpec((rows_blk, 1), lambda r, t: (r, 0)),
                  pl.BlockSpec((rows_blk, tile_hw), lambda r, t: (r, t))],
        out_specs=pl.BlockSpec((rows_blk, tile_hw), lambda r, t: (r, t)),
        compiler_params=pltpu.CompilerParams(
            dimension_semantics=("parallel", "parallel"),
            vmem_limit_bytes=vmem_limit),
        cost_estimate=pl.CostEstimate(
            flops=6 * NC * HW, transcendentals=0,
            bytes_accessed=2 * NC * HW * itemsize),
    )(qparams, scale_rows, shift_rows, x2)

    # Free reshape back to NCHW.
    return out.reshape(N, C, H, W), delta


def _reference(x, gamma, beta, *, qbit=4, eps=1e-5):
    h_lvl = float(2 ** (qbit - 1) - 1)
    mean = jnp.mean(x, axis=(0, 2, 3), keepdims=True)
    var = jnp.var(x, axis=(0, 2, 3), keepdims=True)
    y = (x - mean) / jnp.sqrt(var + eps)
    y = y * gamma[None, :, None, None] + beta[None, :, None, None]
    delta = jnp.max(jnp.abs(y)) / h_lvl
    y = jnp.clip(y, -h_lvl * delta, h_lvl * delta)
    return jnp.round(y / delta) * delta


if __name__ == "__main__":
    key = jax.random.PRNGKey(0)
    kx, kg, kb = jax.random.split(key, 3)

    N, C, H, W = 2, 4, 16, 16
    qbit = 4

    x = jax.random.normal(kx, (N, C, H, W), dtype=jnp.float32)
    gamma = jax.random.uniform(kg, (C,), dtype=jnp.float32,
                               minval=0.5, maxval=1.5)   # BN weight
    beta = 0.1 * jax.random.normal(kb, (C,), dtype=jnp.float32)  # BN bias

    out, delta_x = qbn2d_forward(x, gamma, beta, qbit=qbit)
    out = jax.block_until_ready(out)

    ref = _reference(x, gamma, beta, qbit=qbit)
    assert out.shape == (N, C, H, W)
    assert jnp.allclose(out, ref, atol=1e-4), "mismatch vs pure-JAX reference"

    print("KERNEL_OK")
</pallas_src>

<mosaic_0001>
module attributes {stable_mosaic.version = 11 : i64} {
  func.func @_stats_kernel(%arg0: i32, %arg1: i32, %arg2: i32, %arg3: memref<8x256xf32, #tpu.memory_space<vmem>>, %arg4: memref<1x8x128xf32, #tpu.memory_space<vmem>>, %arg5: memref<1x8x128xf32, #tpu.memory_space<vmem>>, %arg6: memref<1x8x128xf32, #tpu.memory_space<vmem>>, %arg7: memref<1x8x128xf32, #tpu.memory_space<vmem>>) attributes {dimension_semantics = [#tpu.dimension_semantics<parallel>, #tpu.dimension_semantics<parallel>, #tpu.dimension_semantics<arbitrary>], iteration_bounds = array<i64: 1, 1, 1>, scalar_prefetch = 0 : i64, scratch_operands = 0 : i64, tpu.core_type = #tpu.core_type<tc>, window_params = [{transform_indices = @transform_0, window_bounds = array<i64: 8, 256>}, {transform_indices = @transform_1, window_bounds = array<i64: 1, 8, 128>}, {transform_indices = @transform_2, window_bounds = array<i64: 1, 8, 128>}, {transform_indices = @transform_3, window_bounds = array<i64: 1, 8, 128>}, {transform_indices = @transform_4, window_bounds = array<i64: 1, 8, 128>}]} {
    %c0_i32 = arith.constant 0 : i32
    %0 = arith.cmpi eq, %arg2, %c0_i32 : i32
    %1 = arith.extui %0 : i1 to i32
    %c0_i32_0 = arith.constant 0 : i32
    %2 = arith.cmpi ne, %1, %c0_i32_0 : i32
    scf.if %2 {
      %cst = arith.constant 0.000000e+00 : f32
      %35 = vector.broadcast %cst : f32 to vector<8x128xf32>
      %c0_27 = arith.constant 0 : index
      %c0_28 = arith.constant 0 : index
      %c0_29 = arith.constant 0 : index
      %36 = vector.load %arg4[%c0_27, %c0_28, %c0_29] : memref<1x8x128xf32, #tpu.memory_space<vmem>>, vector<1x8x128xf32>
      %37 = vector.shape_cast %36 : vector<1x8x128xf32> to vector<8x128xf32>
      %38 = vector.shape_cast %35 : vector<8x128xf32> to vector<1x8x128xf32>
      tpu.vector_store %arg4[%c0_27, %c0_28, %c0_29], %38 {strides = array<i32>} : memref<1x8x128xf32, #tpu.memory_space<vmem>>, vector<1x8x128xf32>,
      %cst_30 = arith.constant 0.000000e+00 : f32
      %39 = vector.broadcast %cst_30 : f32 to vector<8x128xf32>
      %c0_31 = arith.constant 0 : index
      %c0_32 = arith.constant 0 : index
      %c0_33 = arith.constant 0 : index
      %40 = vector.load %arg5[%c0_31, %c0_32, %c0_33] : memref<1x8x128xf32, #tpu.memory_space<vmem>>, vector<1x8x128xf32>
      %41 = vector.shape_cast %40 : vector<1x8x128xf32> to vector<8x128xf32>
      %42 = vector.shape_cast %39 : vector<8x128xf32> to vector<1x8x128xf32>
      tpu.vector_store %arg5[%c0_31, %c0_32, %c0_33], %42 {strides = array<i32>} : memref<1x8x128xf32, #tpu.memory_space<vmem>>, vector<1x8x128xf32>,
      %cst_34 = arith.constant 0x7F800000 : f32
      %43 = vector.broadcast %cst_34 : f32 to vector<8x128xf32>
      %c0_35 = arith.constant 0 : index
      %c0_36 = arith.constant 0 : index
      %c0_37 = arith.constant 0 : index
      %44 = vector.load %arg6[%c0_35, %c0_36, %c0_37] : memref<1x8x128xf32, #tpu.memory_space<vmem>>, vector<1x8x128xf32>
      %45 = vector.shape_cast %44 : vector<1x8x128xf32> to vector<8x128xf32>
      %46 = vector.shape_cast %43 : vector<8x128xf32> to vector<1x8x128xf32>
      tpu.vector_store %arg6[%c0_35, %c0_36, %c0_37], %46 {strides = array<i32>} : memref<1x8x128xf32, #tpu.memory_space<vmem>>, vector<1x8x128xf32>,
      %cst_38 = arith.constant 0xFF800000 : f32
      %47 = vector.broadcast %cst_38 : f32 to vector<8x128xf32>
      %c0_39 = arith.constant 0 : index
      %c0_40 = arith.constant 0 : index
      %c0_41 = arith.constant 0 : index
      %48 = vector.load %arg7[%c0_39, %c0_40, %c0_41] : memref<1x8x128xf32, #tpu.memory_space<vmem>>, vector<1x8x128xf32>
      %49 = vector.shape_cast %48 : vector<1x8x128xf32> to vector<8x128xf32>
      %50 = vector.shape_cast %47 : vector<8x128xf32> to vector<1x8x128xf32>
      tpu.vector_store %arg7[%c0_39, %c0_40, %c0_41], %50 {strides = array<i32>} : memref<1x8x128xf32, #tpu.memory_space<vmem>>, vector<1x8x128xf32>,
    } else {
    }
    %c0 = arith.constant 0 : index
    %c0_1 = arith.constant 0 : index
    %c0_2 = arith.constant 0 : index
    %3 = vector.load %arg4[%c0, %c0_1, %c0_2] : memref<1x8x128xf32, #tpu.memory_space<vmem>>, vector<1x8x128xf32>
    %4 = vector.shape_cast %3 : vector<1x8x128xf32> to vector<8x128xf32>
    %c0_3 = arith.constant 0 : index
    %c0_4 = arith.constant 0 : index
    %c0_5 = arith.constant 0 : index
    %5 = vector.load %arg5[%c0_3, %c0_4, %c0_5] : memref<1x8x128xf32, #tpu.memory_space<vmem>>, vector<1x8x128xf32>
    %6 = vector.shape_cast %5 : vector<1x8x128xf32> to vector<8x128xf32>
    %c0_6 = arith.constant 0 : index
    %c0_7 = arith.constant 0 : index
    %c0_8 = arith.constant 0 : index
    %7 = vector.load %arg6[%c0_6, %c0_7, %c0_8] : memref<1x8x128xf32, #tpu.memory_space<vmem>>, vector<1x8x128xf32>
    %8 = vector.shape_cast %7 : vector<1x8x128xf32> to vector<8x128xf32>
    %c0_9 = arith.constant 0 : index
    %c0_10 = arith.constant 0 : index
    %c0_11 = arith.constant 0 : index
    %9 = vector.load %arg7[%c0_9, %c0_10, %c0_11] : memref<1x8x128xf32, #tpu.memory_space<vmem>>, vector<1x8x128xf32>
    %10 = vector.shape_cast %9 : vector<1x8x128xf32> to vector<8x128xf32>
    %c0_12 = arith.constant 0 : index
    %c0_13 = arith.constant 0 : index
    %11 = vector.load %arg3[%c0_12, %c0_13] : memref<8x256xf32, #tpu.memory_space<vmem>>, vector<8x128xf32>
    %12 = arith.addf %4, %11 : vector<8x128xf32>
    %13 = arith.mulf %11, %11 : vector<8x128xf32>
    %14 = arith.addf %6, %13 : vector<8x128xf32>
    %15 = arith.minimumf %8, %11 : vector<8x128xf32>
    %16 = arith.maximumf %10, %11 : vector<8x128xf32>
    %c0_14 = arith.constant 0 : index
    %c128 = arith.constant 128 : index
    %17 = vector.load %arg3[%c0_14, %c128] : memref<8x256xf32, #tpu.memory_space<vmem>>, vector<8x128xf32>
    %18 = arith.addf %12, %17 : vector<8x128xf32>
    %19 = arith.mulf %17, %17 : vector<8x128xf32>
    %20 = arith.addf %14, %19 : vector<8x128xf32>
    %21 = arith.minimumf %15, %17 : vector<8x128xf32>
    %22 = arith.maximumf %16, %17 : vector<8x128xf32>
    %c0_15 = arith.constant 0 : index
    %c0_16 = arith.constant 0 : index
    %c0_17 = arith.constant 0 : index
    %23 = vector.load %arg4[%c0_15, %c0_16, %c0_17] : memref<1x8x128xf32, #tpu.memory_space<vmem>>, vector<1x8x128xf32>
    %24 = vector.shape_cast %23 : vector<1x8x128xf32> to vector<8x128xf32>
    %25 = vector.shape_cast %18 : vector<8x128xf32> to vector<1x8x128xf32>
    tpu.vector_store %arg4[%c0_15, %c0_16, %c0_17], %25 {strides = array<i32>} : memref<1x8x128xf32, #tpu.memory_space<vmem>>, vector<1x8x128xf32>,
    %c0_18 = arith.constant 0 : index
    %c0_19 = arith.constant 0 : index
    %c0_20 = arith.constant 0 : index
    %26 = vector.load %arg5[%c0_18, %c0_19, %c0_20] : memref<1x8x128xf32, #tpu.memory_space<vmem>>, vector<1x8x128xf32>
    %27 = vector.shape_cast %26 : vector<1x8x128xf32> to vector<8x128xf32>
    %28 = vector.shape_cast %20 : vector<8x128xf32> to vector<1x8x128xf32>
    tpu.vector_store %arg5[%c0_18, %c0_19, %c0_20], %28 {strides = array<i32>} : memref<1x8x128xf32, #tpu.memory_space<vmem>>, vector<1x8x128xf32>,
    %c0_21 = arith.constant 0 : index
    %c0_22 = arith.constant 0 : index
    %c0_23 = arith.constant 0 : index
    %29 = vector.load %arg6[%c0_21, %c0_22, %c0_23] : memref<1x8x128xf32, #tpu.memory_space<vmem>>, vector<1x8x128xf32>
    %30 = vector.shape_cast %29 : vector<1x8x128xf32> to vector<8x128xf32>
    %31 = vector.shape_cast %21 : vector<8x128xf32> to vector<1x8x128xf32>
    tpu.vector_store %arg6[%c0_21, %c0_22, %c0_23], %31 {strides = array<i32>} : memref<1x8x128xf32, #tpu.memory_space<vmem>>, vector<1x8x128xf32>,
    %c0_24 = arith.constant 0 : index
    %c0_25 = arith.constant 0 : index
    %c0_26 = arith.constant 0 : index
    %32 = vector.load %arg7[%c0_24, %c0_25, %c0_26] : memref<1x8x128xf32, #tpu.memory_space<vmem>>, vector<1x8x128xf32>
    %33 = vector.shape_cast %32 : vector<1x8x128xf32> to vector<8x128xf32>
    %34 = vector.shape_cast %22 : vector<8x128xf32> to vector<1x8x128xf32>
    tpu.vector_store %arg7[%c0_24, %c0_25, %c0_26], %34 {strides = array<i32>} : memref<1x8x128xf32, #tpu.memory_space<vmem>>, vector<1x8x128xf32>,
    return
  }
  func.func @transform_0(%arg0: i32, %arg1: i32, %arg2: i32) -> (i32, i32) {
    %c1_i32 = arith.constant 1 : i32
    %0 = arith.muli %arg1, %c1_i32 : i32
    %1 = arith.addi %0, %arg2 : i32
    %c0_i32 = arith.constant 0 : i32
    return %arg0, %1 : i32, i32
  }
  func.func @transform_1(%arg0: i32, %arg1: i32, %arg2: i32) -> (i32, i32, i32) {
    %c0_i32 = arith.constant 0 : i32
    %c0_i32_0 = arith.constant 0 : i32
    return %arg1, %arg0, %c0_i32 : i32, i32, i32
  }
  func.func @transform_2(%arg0: i32, %arg1: i32, %arg2: i32) -> (i32, i32, i32) {
    %c0_i32 = arith.constant 0 : i32
    %c0_i32_0 = arith.constant 0 : i32
    return %arg1, %arg0, %c0_i32 : i32, i32, i32
  }
  func.func @transform_3(%arg0: i32, %arg1: i32, %arg2: i32) -> (i32, i32, i32) {
    %c0_i32 = arith.constant 0 : i32
    %c0_i32_0 = arith.constant 0 : i32
    return %arg1, %arg0, %c0_i32 : i32, i32, i32
  }
  func.func @transform_4(%arg0: i32, %arg1: i32, %arg2: i32) -> (i32, i32, i32) {
    %c0_i32 = arith.constant 0 : i32
    %c0_i32_0 = arith.constant 0 : i32
    return %arg1, %arg0, %c0_i32 : i32, i32, i32
  }
}

</mosaic_0001>

<bundles_post_ra>
// kernel: tpu_custom_call.1
= control target key start
LH: loop header
LB: loop body
LE: loop exit
PB: predicated region body
PF: predicated region fallthrough
CT: control target
= control target key end

     0   :  { %10 = vsyncpa [#allocation3], 0  ;;  %s354_s0 = inlined_call_operand.hbm [shape: f32[8,256], index: 0, kind: input, shape index: {}]   ;;  %s355_s1 = inlined_call_operand.hbm [shape: f32[1,8,128], index: 1, kind: output, shape index: {0}]   ;;  %s356_s2 = inlined_call_operand.hbm [shape: f32[1,8,128], index: 2, kind: output, shape index: {1}]   ;;  %s357_s3 = inlined_call_operand.hbm [shape: f32[1,8,128], index: 3, kind: output, shape index: {2}]   ;;  %s358_s4 = inlined_call_operand.hbm [shape: f32[1,8,128], index: 4, kind: output, shape index: {3}]  }
   0x1   :  { %11 = vsyncpa [#allocation4], 0 }
   0x2   :  { %12 = vsyncpa [#allocation7], 0 }
   0x3   :  { %13 = vsyncpa [#allocation10], 0  ;;  %s243_s15 = smov [#allocation2]   ;;  %s125_s19 = scalar_lea.hbm %s354_s0, 256 }
   0x4   :  { %s24_s16 = sshll.u32 %s243_s15, 4  ;;  %p126_p0 = scmp.ne.s32.totalorder %s354_s0, %s125_s19  ;;  %s25_s16 = int_to_ptr.vmem [resolvable:$true] %s24_s16 }
   0x5   :  { %p129_p1 = scmp.lt.u32.totalorder %s125_s19, %s354_s0 }
   0x7   :  { %p131_p2 = pnand %p129_p1, %p126_p0 }
   0x9   :  { %134 = shalt.err (!%p131_p2)
}
   0xa   :  { %s135_s24 = scalar_lea.vmem %s25_s16, 256  ;;  %p140_p4 = scmp.lt.s32.totalorder %s25_s16, %s25_s16 }
   0xb   :  { %p136_p3 = scmp.ne.s32.totalorder %s25_s16, %s135_s24  ;;  %p141_p5 = scmp.lt.s32.totalorder %s135_s24, %s135_s24 }
   0xd   :  { %p142_p6 = por %p141_p5, %p140_p4 }
   0xf   :  { %p143_p7 = pnand %p142_p6, %p136_p3 }
  0x11   :  { %146 = shalt.err (!%p143_p7)
}
  0x12   :  { %27 = dma.hbm_to_vmem [thread:$0]  %s354_s0, 256, %s25_s16, [#allocation3]  }
  0x13   :  { %235 = dma.done.wait [#allocation3], 256  }
  0x14   :  { %236 = vsyncadd [#allocation3], 4294967040  ;;  %v45_v0 = vld [vmem:[#allocation2] sm:$0xff]  ;;  %v51_v1 = vld [vmem:[#allocation2 + $0x8] sm:$0xff]  ;;  %s244_s27 = smov [#allocation5]   ;;  %s245_s29 = smov [#allocation9]  }
  0x15   :  { %s67_s28 = sshll.u32 %s244_s27, 4  ;;  %v47_v2 = vmul.f32 %v45_v0, %v45_v0  ;;  %v53_v3 = vmul.f32 %v51_v1, %v51_v1  ;;  %s97_s30 = sshll.u32 %s245_s29, 4  ;;  %v52_v4 = vadd.f32 %v51_v1, %v45_v0  ;;  %v55_v5 = vmin.f32 %v45_v0, %v51_v1  ;;  %s68_s28 = int_to_ptr.vmem [resolvable:$true] %s67_s28  ;;  %s285_s30 = int_to_ptr.vmem [resolvable:$true] %s97_s30 }
  0x16   :  { %s246_s5 = smov [#allocation6]   ;;  %s247_s7 = smov [#allocation8]   ;;  %v56_v6 = vmax.f32 %v45_v0, %v51_v1 }
  0x17   :  { %s77_s6 = sshll.u32 %s246_s5, 4  ;;  %s87_s8 = sshll.u32 %s247_s7, 4  ;;  %v54_v7 = vadd.f32 %v53_v3, %v47_v2  ;;  %57 = vst [vmem:[#allocation5] sm:$0xff] %v52_v4  ;;  %59 = vst [vmem:[#allocation8] sm:$0xff] %v55_v5  ;;  %s287_s6 = int_to_ptr.vmem [resolvable:$true] %s77_s6  ;;  %s289_s8 = int_to_ptr.vmem [resolvable:$true] %s87_s8 }
  0x18   :  { %60 = vst [vmem:[#allocation9] sm:$0xff] %v56_v6  ;;  %s147_s0 = scalar_lea.vmem %s68_s28, 128  ;;  %p152_p9 = scmp.lt.s32.totalorder %s68_s28, %s68_s28 }
  0x19   :  { %p148_p8 = scmp.ne.s32.totalorder %s68_s28, %s147_s0  ;;  %p153_p10 = scmp.lt.s32.totalorder %s147_s0, %s147_s0 }
  0x1b   :  { %p154_p11 = por %p153_p10, %p152_p9 }
  0x1d   :  { %p155_p12 = pnand %p154_p11, %p148_p8 }
  0x1f   :  { %158 = shalt.err (!%p155_p12)
}
  0x20   :  { %s159_s11 = scalar_lea.hbm %s355_s1, 128 }
  0x21   :  { %p160_p13 = scmp.ne.s32.totalorder %s355_s1, %s159_s11  ;;  %p163_p0 = scmp.lt.u32.totalorder %s159_s11, %s355_s1 }
  0x23   :  { %p165_p1 = pnand %p163_p0, %p160_p13 }
  0x25   :  { %168 = shalt.err (!%p165_p1)
}
  0x26   :  { %70 = dma.vmem_to_hbm [thread:$0]  %s68_s28, 128, %s355_s1, [#allocation4]   ;;  %58 = vst [vmem:[#allocation6] sm:$0xff] %v54_v7 }
  0x27   :  { %s169_s18 = scalar_lea.vmem %s285_s30, 128  ;;  %p174_p3 = scmp.lt.s32.totalorder %s285_s30, %s285_s30 }
  0x28   :  { %p170_p2 = scmp.ne.s32.totalorder %s285_s30, %s169_s18  ;;  %p175_p4 = scmp.lt.s32.totalorder %s169_s18, %s169_s18 }
  0x2a   :  { %p176_p5 = por %p175_p4, %p174_p3 }
  0x2c   :  { %p177_p6 = pnand %p176_p5, %p170_p2 }
  0x2e   :  { %180 = shalt.err (!%p177_p6)
}
  0x2f   :  { %s181_s21 = scalar_lea.hbm %s358_s4, 128 }
  0x30   :  { %p182_p7 = scmp.ne.s32.totalorder %s358_s4, %s181_s21  ;;  %p185_p8 = scmp.lt.u32.totalorder %s181_s21, %s358_s4 }
  0x32   :  { %p187_p9 = pnand %p185_p8, %p182_p7 }
  0x34   :  { %190 = shalt.err (!%p187_p9)
}
  0x35   :  { %100 = dma.vmem_to_hbm [thread:$0]  %s285_s30, 128, %s358_s4, [#allocation10]  }
  0x36   :  { %s191_s27 = scalar_lea.vmem %s287_s6, 128  ;;  %p196_p11 = scmp.lt.s32.totalorder %s287_s6, %s287_s6 }
  0x37   :  { %p192_p10 = scmp.ne.s32.totalorder %s287_s6, %s191_s27  ;;  %p197_p12 = scmp.lt.s32.totalorder %s191_s27, %s191_s27 }
  0x39   :  { %p198_p13 = por %p197_p12, %p196_p11 }
  0x3b   :  { %p199_p0 = pnand %p198_p13, %p192_p10 }
  0x3d   :  { %202 = shalt.err (!%p199_p0)
}
  0x3e   :  { %s203_s5 = scalar_lea.hbm %s356_s2, 128 }
  0x3f   :  { %p204_p1 = scmp.ne.s32.totalorder %s356_s2, %s203_s5  ;;  %p207_p2 = scmp.lt.u32.totalorder %s203_s5, %s356_s2 }
  0x41   :  { %p209_p3 = pnand %p207_p2, %p204_p1 }
  0x43   :  { %212 = shalt.err (!%p209_p3)
}
  0x44   :  { %80 = dma.vmem_to_hbm [thread:$0]  %s287_s6, 128, %s356_s2, [#allocation7]  }
  0x45   :  { %s213_s11 = scalar_lea.vmem %s289_s8, 128  ;;  %p218_p5 = scmp.lt.s32.totalorder %s289_s8, %s289_s8 }
  0x46   :  { %p214_p4 = scmp.ne.s32.totalorder %s289_s8, %s213_s11  ;;  %p219_p6 = scmp.lt.s32.totalorder %s213_s11, %s213_s11 }
  0x48   :  { %p220_p7 = por %p219_p6, %p218_p5 }
  0x4a   :  { %p221_p8 = pnand %p220_p7, %p214_p4 }
  0x4c   :  { %224 = shalt.err (!%p221_p8)
}
  0x4d   :  { %s225_s14 = scalar_lea.hbm %s357_s3, 128 }
  0x4e   :  { %p226_p9 = scmp.ne.s32.totalorder %s357_s3, %s225_s14  ;;  %p229_p10 = scmp.lt.u32.totalorder %s225_s14, %s357_s3 }
  0x50   :  { %p231_p11 = pnand %p229_p10, %p226_p9 }
  0x52   :  { %234 = shalt.err (!%p231_p11)
}
  0x53   :  { %90 = dma.vmem_to_hbm [thread:$0]  %s289_s8, 128, %s357_s3, [#allocation7]  }
  0x54   :  { %237 = dma.done.wait [#allocation4], 128  }
  0x55   :  { %238 = vsyncadd [#allocation4], 4294967168 }
  0x56   :  { %239 = dma.done.wait [#allocation7], 256  }
  0x57   :  { %240 = vsyncadd [#allocation7], 4294967040 }
  0x58   :  { %241 = dma.done.wait [#allocation10], 128  }
  0x59   :  { %242 = vsyncadd [#allocation10], 4294967168 }
  0x5a   :  { %113 = vsyncpa [#allocation3], 1 }
  0x5b   :  { %114 = vsyncpa [#allocation4], 1 }
  0x5c   :  { %115 = vsyncpa [#allocation7], 1 }
  0x5d   :  { %116 = vsyncpa [#allocation10], 1 }

</bundles_post_ra>
